<compile_context>
chip_gen: v7x
topology: tpu7x:2x2x1
jax: 0.10.0
libtpu: 0.0.40
codegen_flags: <defaults>
</compile_context>

<pallas_src>
import functools

import jax
import jax.numpy as jnp
from jax.experimental import pallas as pl
from jax.experimental.pallas import tpu as pltpu


def _round_up(v, m):
    return -(-v // m) * m


def _residual_mlp_kernel(x_ref, w1_ref, b1_ref, w2_ref, b2_ref, w3_ref, b3_ref,
                         o_ref):
    """One row tile: out = x + relu(relu(relu(x@W1+b1)@W2+b2)@W3+b3)."""
    x = x_ref[...]

    # MXU matmuls in the weight dtype (bf16 when requested), f32 accumulation.
    h = jnp.dot(x.astype(w1_ref.dtype), w1_ref[...],
                preferred_element_type=jnp.float32) + b1_ref[...]
    h = jnp.maximum(h, 0.0)

    h = jnp.dot(h.astype(w2_ref.dtype), w2_ref[...],
                preferred_element_type=jnp.float32) + b2_ref[...]
    h = jnp.maximum(h, 0.0)

    h = jnp.dot(h.astype(w3_ref.dtype), w3_ref[...],
                preferred_element_type=jnp.float32) + b3_ref[...]
    h = jnp.maximum(h, 0.0)

    # Residual add in f32 against the non-truncated input, single cast on store.
    o_ref[...] = (x.astype(jnp.float32) + h).astype(o_ref.dtype)


@functools.partial(jax.jit, static_argnames=("tile_m", "compute_dtype"))
def residual_block(x, params, *, tile_m=256, compute_dtype=None):
    """x: [N, D]; params: (w1,b1,w2,b2,w3,b3) with w_i [in,out], b_i [1,out]."""
    n, d = x.shape
    w1, b1, w2, b2, w3, b3 = params
    units = w1.shape[1]
    assert w1.shape[0] == d
    assert w2.shape == (units, units)
    assert w3.shape == (units, d), "residual requires output_size == input_size"

    x_dt = x.dtype
    w_dt = jnp.dtype(compute_dtype) if compute_dtype is not None else w1.dtype
    isz = lambda dt: jnp.dtype(dt).itemsize

    # Lane-dense padding: feature dims -> multiples of 128.
    d_p = _round_up(d, 128)
    u_p = _round_up(units, 128)

    # Effective row tile: clamp to the sublane-rounded row count so small N does
    # not pay for a full 256-row tile of padded compute; large N keeps big tiles.
    tm = min(tile_m, _round_up(n, 8))
    n_p = _round_up(n, tm)

    def pad2(a, rows, cols, dt):
        a = a.astype(dt)
        if a.shape == (rows, cols):
            return a
        return jnp.zeros((rows, cols), dt).at[:a.shape[0], :a.shape[1]].set(a)

    xp = pad2(x, n_p, d_p, x_dt)
    w1p = pad2(w1, d_p, u_p, w_dt)
    w2p = pad2(w2, u_p, u_p, w_dt)
    w3p = pad2(w3, u_p, d_p, w_dt)
    b1p = pad2(b1, 1, u_p, jnp.float32)
    b2p = pad2(b2, 1, u_p, jnp.float32)
    b3p = pad2(b3, 1, d_p, jnp.float32)

    grid = (n_p // tm,)

    # VMEM budget: double-buffered x/out row tiles + resident weights/biases,
    # with headroom; capped at 64 MiB so it is valid on v7x as well as v5e/v6e.
    # TODO(synk): single-buffer the grid-invariant weight specs via
    # pipeline_mode=pl.Buffered(1) once verified on the target jax build.
    tile_bytes = 2 * tm * d_p * isz(x_dt)                           # x tile + out tile
    weight_bytes = ((d_p * u_p + u_p * u_p + u_p * d_p) * isz(w_dt)
                    + (2 * u_p + d_p) * 4)
    vmem_limit = int(min(64 * 2 ** 20,
                         max(16 * 2 ** 20, 4 * (tile_bytes + weight_bytes))))

    flops = 2 * n_p * (d_p * u_p + u_p * u_p + u_p * d_p)
    bytes_accessed = 2 * n_p * d_p * isz(x_dt) + weight_bytes

    full = lambda shape: pl.BlockSpec(shape, lambda i: (0, 0))

    out = pl.pallas_call(
        _residual_mlp_kernel,
        out_shape=jax.ShapeDtypeStruct((n_p, d_p), x_dt),
        grid_spec=pltpu.PrefetchScalarGridSpec(
            num_scalar_prefetch=0,
            grid=grid,
            in_specs=[
                pl.BlockSpec((tm, d_p), lambda i: (i, 0)),   # x row tile
                full((d_p, u_p)), full((1, u_p)),            # layer 1
                full((u_p, u_p)), full((1, u_p)),            # layer 2
                full((u_p, d_p)), full((1, d_p)),            # output layer
            ],
            out_specs=pl.BlockSpec((tm, d_p), lambda i: (i, 0)),
        ),
        compiler_params=pltpu.CompilerParams(
            dimension_semantics=("parallel",),
            vmem_limit_bytes=vmem_limit),
        cost_estimate=pl.CostEstimate(
            flops=flops, transcendentals=0, bytes_accessed=bytes_accessed),
    )(xp, w1p, b1p, w2p, b2p, w3p, b3p)

    if n_p == n and d_p == d:
        return out
    return out[:n, :d]


def init_params(key, input_size, units, output_size):
    """Deterministic init mimicking PyTorch Linear default (U[-1/sqrt(in), 1/sqrt(in)])."""
    ks = jax.random.split(key, 6)

    def lin(kw, kb, fan_in, fan_out):
        bound = 1.0 / jnp.sqrt(fan_in)
        w = jax.random.uniform(kw, (fan_in, fan_out), jnp.float32, -bound, bound)
        b = jax.random.uniform(kb, (1, fan_out), jnp.float32, -bound, bound)
        return w, b

    w1, b1 = lin(ks[0], ks[1], input_size, units)
    w2, b2 = lin(ks[2], ks[3], units, units)
    w3, b3 = lin(ks[4], ks[5], units, output_size)
    return (w1, b1, w2, b2, w3, b3)


def residual_block_ref(x, params):
    """Pure-JAX reference of the PyTorch forward."""
    w1, b1, w2, b2, w3, b3 = params
    h = jnp.maximum(x @ w1 + b1, 0.0)
    h = jnp.maximum(h @ w2 + b2, 0.0)
    h = jnp.maximum(h @ w3 + b3, 0.0)
    return x + h


if __name__ == "__main__":
    # ResidualBlock(input_size=32, units=64, n_hidden=2, output_size=32, activation=ReLU)
    N, D, UNITS = 16, 32, 64

    key = jax.random.PRNGKey(0)
    kx, kp = jax.random.split(key)
    x = jax.random.normal(kx, (N, D), dtype=jnp.float32)
    params = init_params(kp, D, UNITS, D)

    ref = residual_block_ref(x, params)

    # f32 path (matches the f32 PyTorch module).
    out = jax.block_until_ready(residual_block(x, params))
    assert out.shape == (N, D)
    assert jnp.allclose(out, ref, atol=1e-5, rtol=1e-5), "f32 mismatch vs reference"

    # Larger, non-aligned batch exercising multiple row tiles.
    x_big = jax.random.normal(jax.random.PRNGKey(1), (1000, D), dtype=jnp.float32)
    out_big = jax.block_until_ready(residual_block(x_big, params))
    assert out_big.shape == (1000, D)
    assert jnp.allclose(out_big, residual_block_ref(x_big, params),
                        atol=1e-5, rtol=1e-5), "tiled f32 mismatch vs reference"

    # bf16 MXU operands with f32 accumulation + f32 residual (looser tolerance).
    out_bf16 = jax.block_until_ready(
        residual_block(x, params, compute_dtype=jnp.bfloat16))
    assert out_bf16.shape == (N, D)
    assert jnp.allclose(out_bf16, ref, atol=1e-1, rtol=5e-2), "bf16 mismatch vs reference"

    print("KERNEL_OK")
</pallas_src>

<mosaic_0001>
module attributes {stable_mosaic.version = 11 : i64} {
  func.func @_residual_mlp_kernel(%arg0: i32, %arg1: memref<16x128xf32, #tpu.memory_space<vmem>>, %arg2: memref<128x128xf32, #tpu.memory_space<vmem>>, %arg3: memref<1x128xf32, #tpu.memory_space<vmem>>, %arg4: memref<128x128xf32, #tpu.memory_space<vmem>>, %arg5: memref<1x128xf32, #tpu.memory_space<vmem>>, %arg6: memref<128x128xf32, #tpu.memory_space<vmem>>, %arg7: memref<1x128xf32, #tpu.memory_space<vmem>>, %arg8: memref<16x128xf32, #tpu.memory_space<vmem>>) attributes {dimension_semantics = [#tpu.dimension_semantics<parallel>], iteration_bounds = array<i64: 1>, scalar_prefetch = 0 : i64, scratch_operands = 0 : i64, tpu.core_type = #tpu.core_type<tc>, window_params = [{transform_indices = @transform_0, window_bounds = array<i64: 16, 128>}, {pipeline_mode = #tpu.pipeline_mode<synchronous>, transform_indices = @transform_1, window_bounds = array<i64: 128, 128>}, {pipeline_mode = #tpu.pipeline_mode<synchronous>, transform_indices = @transform_2, window_bounds = array<i64: 1, 128>}, {pipeline_mode = #tpu.pipeline_mode<synchronous>, transform_indices = @transform_3, window_bounds = array<i64: 128, 128>}, {pipeline_mode = #tpu.pipeline_mode<synchronous>, transform_indices = @transform_4, window_bounds = array<i64: 1, 128>}, {pipeline_mode = #tpu.pipeline_mode<synchronous>, transform_indices = @transform_5, window_bounds = array<i64: 128, 128>}, {pipeline_mode = #tpu.pipeline_mode<synchronous>, transform_indices = @transform_6, window_bounds = array<i64: 1, 128>}, {transform_indices = @transform_7, window_bounds = array<i64: 16, 128>}]} {
    %c0 = arith.constant 0 : index
    %c0_0 = arith.constant 0 : index
    %0 = vector.load %arg1[%c0, %c0_0] : memref<16x128xf32, #tpu.memory_space<vmem>>, vector<16x128xf32>
    %c0_1 = arith.constant 0 : index
    %c0_2 = arith.constant 0 : index
    %1 = vector.load %arg2[%c0_1, %c0_2] : memref<128x128xf32, #tpu.memory_space<vmem>>, vector<128x128xf32>
    %cst = arith.constant dense<0.000000e+00> : vector<16x128xf32>
    %2 = tpu.matmul %0, %1, %cst {dimension_numbers = #tpu.dot_dimension_numbers<[1], [0], [0], [1], [0, 0, 1, 1], [], []>} : vector<16x128xf32>, vector<128x128xf32>, vector<16x128xf32> -> vector<16x128xf32>
    %c0_3 = arith.constant 0 : index
    %c0_4 = arith.constant 0 : index
    %3 = vector.load %arg3[%c0_3, %c0_4] : memref<1x128xf32, #tpu.memory_space<vmem>>, vector<1x128xf32>
    %4 = vector.broadcast %3 : vector<1x128xf32> to vector<16x128xf32>
    %5 = arith.addf %2, %4 : vector<16x128xf32>
    %cst_5 = arith.constant 0.000000e+00 : f32
    %6 = vector.broadcast %cst_5 : f32 to vector<16x128xf32>
    %7 = arith.maximumf %5, %6 : vector<16x128xf32>
    %c0_6 = arith.constant 0 : index
    %c0_7 = arith.constant 0 : index
    %8 = vector.load %arg4[%c0_6, %c0_7] : memref<128x128xf32, #tpu.memory_space<vmem>>, vector<128x128xf32>
    %cst_8 = arith.constant dense<0.000000e+00> : vector<16x128xf32>
    %9 = tpu.matmul %7, %8, %cst_8 {dimension_numbers = #tpu.dot_dimension_numbers<[1], [0], [0], [1], [0, 0, 1, 1], [], []>} : vector<16x128xf32>, vector<128x128xf32>, vector<16x128xf32> -> vector<16x128xf32>
    %c0_9 = arith.constant 0 : index
    %c0_10 = arith.constant 0 : index
    %10 = vector.load %arg5[%c0_9, %c0_10] : memref<1x128xf32, #tpu.memory_space<vmem>>, vector<1x128xf32>
    %11 = vector.broadcast %10 : vector<1x128xf32> to vector<16x128xf32>
    %12 = arith.addf %9, %11 : vector<16x128xf32>
    %cst_11 = arith.constant 0.000000e+00 : f32
    %13 = vector.broadcast %cst_11 : f32 to vector<16x128xf32>
    %14 = arith.maximumf %12, %13 : vector<16x128xf32>
    %c0_12 = arith.constant 0 : index
    %c0_13 = arith.constant 0 : index
    %15 = vector.load %arg6[%c0_12, %c0_13] : memref<128x128xf32, #tpu.memory_space<vmem>>, vector<128x128xf32>
    %cst_14 = arith.constant dense<0.000000e+00> : vector<16x128xf32>
    %16 = tpu.matmul %14, %15, %cst_14 {dimension_numbers = #tpu.dot_dimension_numbers<[1], [0], [0], [1], [0, 0, 1, 1], [], []>} : vector<16x128xf32>, vector<128x128xf32>, vector<16x128xf32> -> vector<16x128xf32>
    %c0_15 = arith.constant 0 : index
    %c0_16 = arith.constant 0 : index
    %17 = vector.load %arg7[%c0_15, %c0_16] : memref<1x128xf32, #tpu.memory_space<vmem>>, vector<1x128xf32>
    %18 = vector.broadcast %17 : vector<1x128xf32> to vector<16x128xf32>
    %19 = arith.addf %16, %18 : vector<16x128xf32>
    %cst_17 = arith.constant 0.000000e+00 : f32
    %20 = vector.broadcast %cst_17 : f32 to vector<16x128xf32>
    %21 = arith.maximumf %19, %20 : vector<16x128xf32>
    %22 = arith.addf %0, %21 : vector<16x128xf32>
    %c0_18 = arith.constant 0 : index
    %c0_19 = arith.constant 0 : index
    %23 = vector.load %arg8[%c0_18, %c0_19] : memref<16x128xf32, #tpu.memory_space<vmem>>, vector<16x128xf32>
    tpu.vector_store %arg8[%c0_18, %c0_19], %22 {strides = array<i32>} : memref<16x128xf32, #tpu.memory_space<vmem>>, vector<16x128xf32>,
    return
  }
  func.func @transform_0(%arg0: i32) -> (i32, i32) {
    %c0_i32 = arith.constant 0 : i32
    %c0_i32_0 = arith.constant 0 : i32
    return %arg0, %c0_i32 : i32, i32
  }
  func.func @transform_1(%arg0: i32) -> (i32, i32) {
    %c0_i32 = arith.constant 0 : i32
    %c0_i32_0 = arith.constant 0 : i32
    %c0_i32_1 = arith.constant 0 : i32
    return %c0_i32, %c0_i32_0 : i32, i32
  }
  func.func @transform_2(%arg0: i32) -> (i32, i32) {
    %c0_i32 = arith.constant 0 : i32
    %c0_i32_0 = arith.constant 0 : i32
    %c0_i32_1 = arith.constant 0 : i32
    return %c0_i32, %c0_i32_0 : i32, i32
  }
  func.func @transform_3(%arg0: i32) -> (i32, i32) {
    %c0_i32 = arith.constant 0 : i32
    %c0_i32_0 = arith.constant 0 : i32
    %c0_i32_1 = arith.constant 0 : i32
    return %c0_i32, %c0_i32_0 : i32, i32
  }
  func.func @transform_4(%arg0: i32) -> (i32, i32) {
    %c0_i32 = arith.constant 0 : i32
    %c0_i32_0 = arith.constant 0 : i32
    %c0_i32_1 = arith.constant 0 : i32
    return %c0_i32, %c0_i32_0 : i32, i32
  }
  func.func @transform_5(%arg0: i32) -> (i32, i32) {
    %c0_i32 = arith.constant 0 : i32
    %c0_i32_0 = arith.constant 0 : i32
    %c0_i32_1 = arith.constant 0 : i32
    return %c0_i32, %c0_i32_0 : i32, i32
  }
  func.func @transform_6(%arg0: i32) -> (i32, i32) {
    %c0_i32 = arith.constant 0 : i32
    %c0_i32_0 = arith.constant 0 : i32
    %c0_i32_1 = arith.constant 0 : i32
    return %c0_i32, %c0_i32_0 : i32, i32
  }
  func.func @transform_7(%arg0: i32) -> (i32, i32) {
    %c0_i32 = arith.constant 0 : i32
    %c0_i32_0 = arith.constant 0 : i32
    return %arg0, %c0_i32 : i32, i32
  }
}

</mosaic_0001>

<bundles_post_ra>
// kernel: residual_block.1
= control target key start
LH: loop header
LB: loop body
LE: loop exit
PB: predicated region body
PF: predicated region fallthrough
CT: control target
= control target key end

     0   :  { %s856_s0 = inlined_call_operand.vmem [shape: f32[16,128], index: 0, kind: input, shape index: {}]   ;;  %s857_s1 = inlined_call_operand.vmem [shape: f32[128,128], index: 1, kind: input, shape index: {}]   ;;  %s858_s2 = inlined_call_operand.vmem [shape: f32[1,128], index: 2, kind: input, shape index: {}]   ;;  %s859_s3 = inlined_call_operand.vmem [shape: f32[128,128], index: 3, kind: input, shape index: {}]   ;;  %s860_s4 = inlined_call_operand.vmem [shape: f32[1,128], index: 4, kind: input, shape index: {}]   ;;  %s861_s5 = inlined_call_operand.vmem [shape: f32[128,128], index: 5, kind: input, shape index: {}]   ;;  %s862_s6 = inlined_call_operand.vmem [shape: f32[1,128], index: 6, kind: input, shape index: {}]   ;;  %s863_s7 = inlined_call_operand.hbm [shape: f32[16,128], index: 7, kind: output, shape index: {}]  }
   0x1   :  { %v29_v0 = vld [vmem:[%s857_s1] sm:$0xff]  ;;  %v30_v1 = vld [vmem:[%s857_s1 + $0x8] sm:$0xff]  ;;  %v31_v2 = vld [vmem:[%s857_s1 + $0x10] sm:$0xff] }
   0x2   :  { %v511_v3 = vpack.c.bf16 %v30_v1, %v29_v0  ;;  %v32_v4 = vld [vmem:[%s857_s1 + $0x18] sm:$0xff]  ;;  %v33_v6 = vld [vmem:[%s857_s1 + $0x20] sm:$0xff]  ;;  %v34_v7 = vld [vmem:[%s857_s1 + $0x28] sm:$0xff] }
   0x3   :  { %v515_v5 = vpack.c.bf16 %v32_v4, %v31_v2  ;;  %v519_v8 = vpack.c.bf16 %v34_v7, %v33_v6  ;;  %v35_v9 = vld [vmem:[%s857_s1 + $0x30] sm:$0xff]  ;;  %v36_v10 = vld [vmem:[%s857_s1 + $0x38] sm:$0xff]  ;;  %v704_v11 = vld [vmem:[%s856_s0] sm:$0xff] }
   0x4   :  { %512 = vmatprep.subr.bf16.mxu0 %v511_v3  ;;  %438 = vmatprep.mubr.f32.mxu0 %v704_v11  ;;  %v129_v12 = vld [vmem:[%s859_s3] sm:$0xff]  ;;  %v130_v13 = vld [vmem:[%s859_s3 + $0x8] sm:$0xff]  ;;  %v131_v14 = vld [vmem:[%s859_s3 + $0x10] sm:$0xff]  ;;  %v523_v20 = vpack.c.bf16 %v36_v10, %v35_v9 }
   0x5   :  { %514 = vmatpush3.bf16.msra.mxu0 %v511_v3  ;;  %v543_v15 = vpack.c.bf16 %v130_v13, %v129_v12  ;;  %v132_v16 = vld [vmem:[%s859_s3 + $0x18] sm:$0xff]  ;;  %v133_v18 = vld [vmem:[%s859_s3 + $0x20] sm:$0xff]  ;;  %v134_v19 = vld [vmem:[%s859_s3 + $0x28] sm:$0xff] }
   0x6   :  { %516 = vmatprep.subr.bf16.mxu0 %v515_v5  ;;  %v547_v17 = vpack.c.bf16 %v132_v16, %v131_v14  ;;  %v37_v21 = vld [vmem:[%s857_s1 + $0x40] sm:$0xff]  ;;  %v38_v22 = vld [vmem:[%s857_s1 + $0x48] sm:$0xff] }
   0x7   :  { %544 = vmatprep.subr.bf16.mxu1 %v543_v15 }
   0x8   :  { %546 = vmatpush3.bf16.msra.mxu1 %v543_v15 }
   0x9   :  { %518 = vmatpush3.bf16.msra.mxu0 %v515_v5 }
   0xa   :  { %520 = vmatprep.subr.bf16.mxu0 %v519_v8 }
   0xb   :  { %12 = vsyncpa [#allocation3], 0  ;;  %548 = vmatprep.subr.bf16.mxu1 %v547_v17  ;;  %v551_v23 = vpack.c.bf16 %v134_v19, %v133_v18  ;;  %v135_v24 = vld [vmem:[%s859_s3 + $0x30] sm:$0xff]  ;;  %v136_v25 = vld [vmem:[%s859_s3 + $0x38] sm:$0xff]  ;;  %v527_v26 = vpack.c.bf16 %v38_v22, %v37_v21 }
   0xc   :  { %v39_v27 = vld [vmem:[%s857_s1 + $0x50] sm:$0xff]  ;;  %v40_v28 = vld [vmem:[%s857_s1 + $0x58] sm:$0xff]  ;;  %550 = vmatpush3.bf16.msra.mxu1 %v547_v17  ;;  %v555_v29 = vpack.c.bf16 %v136_v25, %v135_v24  ;;  %v137_v30 = vld [vmem:[%s859_s3 + $0x40] sm:$0xff] }
   0xd   :  { %522 = vmatpush3.bf16.msra.mxu0 %v519_v8  ;;  %552 = vmatprep.subr.bf16.mxu1 %v551_v23  ;;  %v138_v31 = vld [vmem:[%s859_s3 + $0x48] sm:$0xff]  ;;  %v531_v32 = vpack.c.bf16 %v40_v28, %v39_v27  ;;  %v41_v33 = vld [vmem:[%s857_s1 + $0x60] sm:$0xff]  ;;  %v139_v36 = vld [vmem:[%s859_s3 + $0x50] sm:$0xff] }
   0xe   :  { %524 = vmatprep.subr.bf16.mxu0 %v523_v20  ;;  %v42_v34 = vld [vmem:[%s857_s1 + $0x68] sm:$0xff]  ;;  %v559_v35 = vpack.c.bf16 %v138_v31, %v137_v30  ;;  %v140_v37 = vld [vmem:[%s859_s3 + $0x58] sm:$0xff]  ;;  %v43_v39 = vld [vmem:[%s857_s1 + $0x70] sm:$0xff] }
   0xf   :  { %v535_v38 = vpack.c.bf16 %v42_v34, %v41_v33  ;;  %v44_v40 = vld [vmem:[%s857_s1 + $0x78] sm:$0xff]  ;;  %v563_v41 = vpack.c.bf16 %v140_v37, %v139_v36  ;;  %v141_v42 = vld [vmem:[%s859_s3 + $0x60] sm:$0xff]  ;;  %v142_v43 = vld [vmem:[%s859_s3 + $0x68] sm:$0xff] }
  0x10   :  { %554 = vmatpush3.bf16.msra.mxu1 %v551_v23  ;;  %v539_v44 = vpack.c.bf16 %v44_v40, %v43_v39  ;;  %v567_v45 = vpack.c.bf16 %v142_v43, %v141_v42  ;;  %v776_v46 = vld [vmem:[%s856_s0 + $0x8] sm:$0xff]  ;;  %v143_v47 = vld [vmem:[%s859_s3 + $0x70] sm:$0xff]  ;;  %v144_v48 = vld [vmem:[%s859_s3 + $0x78] sm:$0xff] }
  0x11   :  { %526 = vmatpush3.bf16.msra.mxu0 %v523_v20  ;;  %556 = vmatprep.subr.bf16.mxu1 %v555_v29  ;;  %v571_v49 = vpack.c.bf16 %v144_v48, %v143_v47  ;;  %v229_v50 = vld [vmem:[%s861_s5] sm:$0xff]  ;;  %v230_v51 = vld [vmem:[%s861_s5 + $0x8] sm:$0xff]  ;;  %v231_v52 = vld [vmem:[%s861_s5 + $0x10] sm:$0xff] }
  0x12   :  { %528 = vmatprep.subr.bf16.mxu0 %v527_v26  ;;  %v575_v53 = vpack.c.bf16 %v230_v51, %v229_v50  ;;  %v232_v54 = vld [vmem:[%s861_s5 + $0x18] sm:$0xff]  ;;  %v233_v56 = vld [vmem:[%s861_s5 + $0x20] sm:$0xff]  ;;  %v234_v57 = vld [vmem:[%s861_s5 + $0x28] sm:$0xff] }
  0x13   :  { %v579_v55 = vpack.c.bf16 %v232_v54, %v231_v52  ;;  %v583_v58 = vpack.c.bf16 %v234_v57, %v233_v56  ;;  %v235_v59 = vld [vmem:[%s861_s5 + $0x30] sm:$0xff]  ;;  %v236_v60 = vld [vmem:[%s861_s5 + $0x38] sm:$0xff]  ;;  %v237_v62 = vld [vmem:[%s861_s5 + $0x40] sm:$0xff] }
  0x14   :  { %558 = vmatpush3.bf16.msra.mxu1 %v555_v29  ;;  %v587_v61 = vpack.c.bf16 %v236_v60, %v235_v59  ;;  %v238_v63 = vld [vmem:[%s861_s5 + $0x48] sm:$0xff]  ;;  %v239_v1 = vld [vmem:[%s861_s5 + $0x50] sm:$0xff]  ;;  %v240_v2 = vld [vmem:[%s861_s5 + $0x58] sm:$0xff] }
  0x15   :  { %530 = vmatpush3.bf16.msra.mxu0 %v527_v26  ;;  %560 = vmatprep.subr.bf16.mxu1 %v559_v35  ;;  %v591_v0 = vpack.c.bf16 %v238_v63, %v237_v62  ;;  %v595_v3 = vpack.c.bf16 %v240_v2, %v239_v1  ;;  %v241_v4 = vld [vmem:[%s861_s5 + $0x60] sm:$0xff]  ;;  %v242_v5 = vld [vmem:[%s861_s5 + $0x68] sm:$0xff]  ;;  %v243_v15 = vld [vmem:[%s861_s5 + $0x70] sm:$0xff] }
  0x16   :  { %532 = vmatprep.subr.bf16.mxu0 %v531_v32  ;;  %v599_v6 = vpack.c.bf16 %v242_v5, %v241_v4  ;;  %v349_v7 = vld [vmem:[%s858_s2] ss:$0 sm:$0xff]  ;;  %v244_v16 = vld [vmem:[%s861_s5 + $0x78] sm:$0xff]  ;;  %s634_s5 = smov [#allocation2]  }
  0x17   :  { %v603_v17 = vpack.c.bf16 %v244_v16, %v243_v15  ;;  %v350_v18 = vld [vmem:[%s860_s4] ss:$0 sm:$0xff]  ;;  %s338_s8 = sshll.u32 %s634_s5, 4  ;;  %s339_s8 = int_to_ptr.vmem [resolvable:$true] %s338_s8 }
  0x18   :  { %562 = vmatpush3.bf16.msra.mxu1 %v559_v35  ;;  %v351_v25 = vld [vmem:[%s862_s6] ss:$0 sm:$0xff]  ;;  %s610_s4 = scalar_lea.vmem %s339_s8, 256  ;;  %p615_p1 = scmp.lt.s32.totalorder %s339_s8, %s339_s8 }
  0x19   :  { %534 = vmatpush3.bf16.msra.mxu0 %v531_v32  ;;  %564 = vmatprep.subr.bf16.mxu1 %v563_v41  ;;  %p611_p0 = scmp.ne.s32.totalorder %s339_s8, %s610_s4  ;;  %p616_p2 = scmp.lt.s32.totalorder %s610_s4, %s610_s4 }
  0x1a   :  { %536 = vmatprep.subr.bf16.mxu0 %v535_v38 }
  0x1b   :  { %p617_p3 = por %p616_p2, %p615_p1 }
  0x1c   :  { %566 = vmatpush3.bf16.msra.mxu1 %v563_v41 }
  0x1d   :  { %538 = vmatpush3.bf16.msra.mxu0 %v535_v38  ;;  %568 = vmatprep.subr.bf16.mxu1 %v567_v45  ;;  %p618_p4 = pnand %p617_p3, %p611_p0 }
  0x1e   :  { %540 = vmatprep.subr.bf16.mxu0 %v539_v44 }
  0x20   :  { %570 = vmatpush3.bf16.msra.mxu1 %v567_v45 }
  0x21   :  { %542 = vmatpush3.bf16.msra.mxu0 %v539_v44  ;;  %572 = vmatprep.subr.bf16.mxu1 %v571_v49 }
  0x22   :  { %576 = vmatprep.subr.bf16.mxu0 %v575_v53 }
  0x24   :  { %439 = vmatmul.mubr.f32.vlgmr.msra.gmra.mrb[0].mxu0 %v776_v46  ;;  %574 = vmatpush3.bf16.msra.mxu1 %v571_v49 }
  0x25   :  { %578 = vmatpush3.bf16.msra.mxu0 %v575_v53 }
  0x26   :  { %580 = vmatprep.subr.bf16.mxu0 %v579_v55 }
  0x29   :  { %582 = vmatpush3.bf16.msra.mxu0 %v579_v55 }
  0x2a   :  { %584 = vmatprep.subr.bf16.mxu0 %v583_v58 }
  0x2d   :  { %586 = vmatpush3.bf16.msra.mxu0 %v583_v58 }
  0x2e   :  { %588 = vmatprep.subr.bf16.mxu0 %v587_v61 }
  0x31   :  { %590 = vmatpush3.bf16.msra.mxu0 %v587_v61 }
  0x32   :  { %592 = vmatprep.subr.bf16.mxu0 %v591_v0 }
  0x35   :  { %594 = vmatpush3.bf16.msra.mxu0 %v591_v0 }
  0x36   :  { %596 = vmatprep.subr.bf16.mxu0 %v595_v3 }
  0x39   :  { %598 = vmatpush3.bf16.msra.mxu0 %v595_v3 }
  0x3a   :  { %600 = vmatprep.subr.bf16.mxu0 %v599_v6 }
  0x3d   :  { %602 = vmatpush3.bf16.msra.mxu0 %v599_v6 }
  0x3e   :  { %604 = vmatprep.subr.bf16.mxu0 %v603_v17 }
  0x41   :  { %606 = vmatpush3.bf16.msra.mxu0 %v603_v17 }
  0xf7   :  { %v440_v8 = vpop.f32.mrb[0].mxu0 }
  0xf8   :  { %v124_v9 = vadd.f32 %v440_v8, %v349_v7  ;;  %v118_v10 = vpop.f32.mrb[1].mxu0 }
  0xf9   :  { %v119_v12 = vadd.f32 %v349_v7, %v118_v10 }
  0xfa   :  { %v128_v14 = vmax.f32 %v124_v9, 0.0 }
  0xfb   :  { %v127_v13 = vmax.f32 %v119_v12, 0.0 }
  0xfd   :  { %473 = vmatprep.mubr.f32.mxu1 %v127_v13 }
  0xfe   :  { %474 = vmatmul.mubr.f32.vlgmr.msra.gmra.mrb[0].mxu1 %v128_v14 }
 0x1d1   :  { %v475_v19 = vpop.f32.mrb[0].mxu1 }
 0x1d2   :  { %v224_v20 = vadd.f32 %v475_v19, %v350_v18  ;;  %v218_v21 = vpop.f32.mrb[1].mxu1 }
 0x1d3   :  { %v219_v22 = vadd.f32 %v350_v18, %v218_v21 }
 0x1d4   :  { %v228_v24 = vmax.f32 %v224_v20, 0.0 }
 0x1d5   :  { %v227_v23 = vmax.f32 %v219_v22, 0.0 }
 0x1d7   :  { %508 = vmatprep.mubr.f32.mxu0 %v227_v23 }
 0x1d8   :  { %509 = vmatmul.mubr.f32.vlgmr.msra.gmra.mrb[2].mxu0 %v228_v24 }
 0x2ab   :  { %v510_v26 = vpop.f32.mrb[2].mxu0 }
 0x2ac   :  { %v324_v27 = vadd.f32 %v510_v26, %v351_v25  ;;  %v318_v28 = vpop.f32.mrb[3].mxu0 }
 0x2ad   :  { %v319_v29 = vadd.f32 %v351_v25, %v318_v28 }
 0x2ae   :  { %v328_v30 = vmax.f32 %v324_v27, 0.0 }
 0x2af   :  { %v327_v31 = vmax.f32 %v319_v29, 0.0 }
 0x2b0   :  { %v330_v32 = vadd.f32 %v328_v30, %v776_v46 }
 0x2b1   :  { %v329_v33 = vadd.f32 %v327_v31, %v704_v11 }
 0x2b2   :  { %332 = vst [vmem:[#allocation2 + $0x8] sm:$0xff] %v330_v32 }
 0x2b3   :  { %331 = vst [vmem:[#allocation2] sm:$0xff] %v329_v33 }
 0x2b4   :  { %621 = shalt.err (!%p618_p4)
}
 0x2b5   :  { %s622_s10 = scalar_lea.hbm %s863_s7, 256 }
 0x2b6   :  { %p623_p5 = scmp.ne.s32.totalorder %s863_s7, %s622_s10  ;;  %p626_p6 = scmp.lt.u32.totalorder %s622_s10, %s863_s7 }
 0x2b8   :  { %p628_p7 = pnand %p626_p6, %p623_p5 }
 0x2ba   :  { %631 = shalt.err (!%p628_p7)
}
 0x2bb   :  { %s635_s15 = smov 128   ;;  %s636_s16 = smov 8  }
 0x2bc   :  { %344 = dma.vmem_to_hbm [thread:$0]  %s339_s8, 256, %s863_s7, [#allocation3], %s635_s15, %s635_s15, %s636_s16  }
 0x2bd   :  { %632 = dma.done.wait [#allocation3], 256  }
 0x2be   :  { %633 = vsyncadd [#allocation3], 4294967040 }
 0x2bf   :  { %348 = vsyncpa [#allocation3], 1 }

</bundles_post_ra>
